<compile_context>
chip_gen: v5e
topology: v5e:2x2
jax: 0.10.0
libtpu: 0.0.40
codegen_flags: <defaults>
</compile_context>

<pallas_src>
import jax
import jax.numpy as jnp
from jax.experimental import pallas as pl
from jax.experimental.pallas import tpu as pltpu

_MIB = 1024 * 1024


def _round_up(n, m):
    return ((n + m - 1) // m) * m


def _ffn_kernel(x_ref, w1_ref, b1_ref, w2_ref, b2_ref, o_ref, acc_ref):
    # x_ref:  (tm, d_model_p)      w1_ref: (d_model_p, tkf)   b1_ref: (1, tkf)
    # w2_ref: (tkf, d_model_p)     b2_ref: (1, d_model_p)
    # o_ref:  (tm, d_model_p)      acc_ref: (tm, d_model_p) f32 scratch
    k = pl.program_id(1)

    # fc1 chunk: native-dtype MXU matmul, f32 accumulation.
    h = jnp.dot(x_ref[...], w1_ref[...], preferred_element_type=jnp.float32)
    h = jnp.maximum(h + b1_ref[...].astype(jnp.float32), 0.0)

    # fc2 partial product over this d_ff chunk.
    partial = jnp.dot(h.astype(w2_ref.dtype), w2_ref[...],
                      preferred_element_type=jnp.float32)

    # First chunk seeds the accumulator with the b2 bias — saves the zero-fill
    # pass and the separate bias-add at finalize.
    @pl.when(k == 0)
    def _():
        acc_ref[...] = partial + b2_ref[...].astype(jnp.float32)

    @pl.when(k > 0)
    def _():
        acc_ref[...] += partial

    @pl.when(k == pl.num_programs(1) - 1)
    def _():
        o_ref[...] = acc_ref[...].astype(o_ref.dtype)


def _vmem_capacity_bytes():
    """Per-core VMEM capacity; conservative 64 MiB (v7x) if the query fails."""
    try:
        cap = int(getattr(pltpu.get_tpu_info(), "vmem_capacity_bytes", 0))
        if cap > 0:
            return cap
    except Exception:
        pass
    return 64 * _MIB


def _vmem_estimate(tm, tkf, d_model_p, act_bytes, w_bytes):
    # Default 2-deep pipelining on every operand + the f32 accumulator scratch.
    return (2 * tm * d_model_p * act_bytes          # x tile
            + 2 * d_model_p * tkf * w_bytes         # w1 chunk
            + 2 * 8 * tkf * w_bytes                 # b1 (sublane-padded)
            + 2 * tkf * d_model_p * w_bytes         # w2 chunk
            + 2 * 8 * d_model_p * w_bytes           # b2
            + 2 * tm * d_model_p * act_bytes        # out tile
            + tm * d_model_p * 4)                   # f32 accumulator


_TILE_CANDIDATES = ((1024, 1024), (1024, 512), (512, 512), (512, 256),
                    (256, 256), (256, 128), (128, 128), (64, 128), (8, 128))


def _select_tiles(rows, d_model_p, d_ff, act_bytes, w_bytes, budget):
    # Keep >= 2 row tiles so the "parallel" i axis feeds both TensorCores.
    tm_cap = max(8, _round_up((rows + 1) // 2, 8)) if rows > 8 else 8
    tkf_cap = _round_up(d_ff, 128)
    tm, tkf = 8, 128
    for tm_c, tkf_c in _TILE_CANDIDATES:
        tm = min(tm_c, tm_cap)
        tkf = min(tkf_c, tkf_cap)
        if _vmem_estimate(tm, tkf, d_model_p, act_bytes, w_bytes) <= budget:
            break
    return tm, tkf


def position_wise_feed_forward(x, w1, b1, w2, b2, *, tm=None, tkf=None):
    """Fused FFN: relu(x @ w1 + b1) @ w2 + b2 (eval-mode dropout = identity).

    x: (batch, seq, d_model); w1: (d_model, d_ff); b1: (d_ff,);
    w2: (d_ff, d_model); b2: (d_model,).
    """
    batch, seq, d_model = x.shape
    d_ff = w1.shape[1]
    rows = batch * seq

    d_model_p = _round_up(d_model, 128)
    act_bytes = x.dtype.itemsize
    w_bytes = w1.dtype.itemsize

    # Generation-aware VMEM budget: ~48 MiB on 64 MiB parts (v7x),
    # ~102 MiB on 128 MiB parts (v5e / v6e).
    cap = _vmem_capacity_bytes()
    vmem_limit = max(min(int(cap * 0.8), cap - 16 * _MIB), 32 * _MIB)
    budget = int(vmem_limit * 0.9)

    auto_tm, auto_tkf = _select_tiles(rows, d_model_p, d_ff,
                                      act_bytes, w_bytes, budget)
    tm = auto_tm if tm is None else min(_round_up(tm, 8), _round_up(rows, 8))
    tkf = auto_tkf if tkf is None else min(_round_up(tkf, 128),
                                           _round_up(d_ff, 128))
    vmem_limit = min(cap, max(vmem_limit,
                              _vmem_estimate(tm, tkf, d_model_p,
                                             act_bytes, w_bytes) + 4 * _MIB))

    d_ff_p = _round_up(d_ff, tkf)

    # Rows: no host-side padding and no output slice — pl.cdiv grid + partial
    # trailing M block (M is not a reduction axis; padded rows never reach HBM).
    x2d = x.reshape(rows, d_model)
    if d_model_p != d_model:
        x2d = jnp.pad(x2d, ((0, 0), (0, d_model_p - d_model)))

    # Feature-dim zero padding is mathematically exact and skipped entirely
    # when d_model / d_ff are already lane-aligned (the common transformer
    # case). In production, hoist these pads to init time (they are a full
    # extra weight read+write per call otherwise).
    if d_model_p != d_model or d_ff_p != d_ff:
        w1 = jnp.pad(w1, ((0, d_model_p - d_model), (0, d_ff_p - d_ff)))
        w2 = jnp.pad(w2, ((0, d_ff_p - d_ff), (0, d_model_p - d_model)))
        b1 = jnp.pad(b1, (0, d_ff_p - d_ff))
        b2 = jnp.pad(b2, (0, d_model_p - d_model))
    b1 = b1.reshape(1, d_ff_p)
    b2 = b2.reshape(1, d_model_p)

    grid = (pl.cdiv(rows, tm), d_ff_p // tkf)

    out2d = pl.pallas_call(
        _ffn_kernel,
        out_shape=jax.ShapeDtypeStruct((rows, d_model_p), x.dtype),
        grid_spec=pltpu.PrefetchScalarGridSpec(
            num_scalar_prefetch=0,
            grid=grid,
            in_specs=[
                pl.BlockSpec((tm, d_model_p), lambda i, k: (i, 0)),   # x tile
                pl.BlockSpec((d_model_p, tkf), lambda i, k: (0, k)),  # w1 chunk
                pl.BlockSpec((1, tkf), lambda i, k: (0, k)),          # b1 chunk
                pl.BlockSpec((tkf, d_model_p), lambda i, k: (k, 0)),  # w2 chunk
                pl.BlockSpec((1, d_model_p), lambda i, k: (0, 0)),    # b2
            ],
            out_specs=pl.BlockSpec((tm, d_model_p), lambda i, k: (i, 0)),
            scratch_shapes=[pltpu.VMEM((tm, d_model_p), jnp.float32)],
        ),
        compiler_params=pltpu.CompilerParams(
            dimension_semantics=("parallel", "arbitrary"),
            vmem_limit_bytes=int(vmem_limit),
        ),
    )(x2d, w1, b1, w2, b2)

    out = out2d if d_model_p == d_model else out2d[:, :d_model]
    return out.reshape(batch, seq, d_model)


def _init_linear(key, fan_in, fan_out, dtype=jnp.float32):
    # Deterministic init mimicking nn.Linear default (Kaiming-uniform-ish).
    kw, kb = jax.random.split(key)
    bound = 1.0 / (fan_in ** 0.5)
    # Stored transposed vs PyTorch: (in_features, out_features).
    w = jax.random.uniform(kw, (fan_in, fan_out), dtype, -bound, bound)
    b = jax.random.uniform(kb, (fan_out,), dtype, -bound, bound)
    return w, b


if __name__ == "__main__":
    d_model, d_ff = 32, 64
    batch, seq = 2, 8

    key = jax.random.PRNGKey(0)
    kx, k1, k2 = jax.random.split(key, 3)

    x = jax.random.normal(kx, (batch, seq, d_model), jnp.float32)
    w1, b1 = _init_linear(k1, d_model, d_ff)
    w2, b2 = _init_linear(k2, d_ff, d_model)

    out = position_wise_feed_forward(x, w1, b1, w2, b2)
    out = jax.block_until_ready(out)

    # Pure-JAX reference (eval-mode dropout == identity).
    ref = jnp.maximum(x @ w1 + b1, 0.0) @ w2 + b2
    assert out.shape == (batch, seq, d_model)
    assert jnp.allclose(out, ref, atol=1e-4, rtol=1e-4)

    print("KERNEL_OK")
</pallas_src>

<mosaic_0001>
module attributes {stable_mosaic.version = 11 : i64} {
  func.func @_ffn_kernel(%arg0: i32, %arg1: i32, %arg2: memref<8x128xf32, #tpu.memory_space<vmem>>, %arg3: memref<128x128xf32, #tpu.memory_space<vmem>>, %arg4: memref<1x128xf32, #tpu.memory_space<vmem>>, %arg5: memref<128x128xf32, #tpu.memory_space<vmem>>, %arg6: memref<1x128xf32, #tpu.memory_space<vmem>>, %arg7: memref<8x128xf32, #tpu.memory_space<vmem>>, %arg8: memref<8x128xf32, #tpu.memory_space<vmem>>) attributes {dimension_semantics = [#tpu.dimension_semantics<parallel>, #tpu.dimension_semantics<arbitrary>], iteration_bounds = array<i64: 2, 1>, scalar_prefetch = 0 : i64, scratch_operands = 1 : i64, tpu.core_type = #tpu.core_type<tc>, window_params = [{transform_indices = @transform_0, window_bounds = array<i64: 8, 128>}, {transform_indices = @transform_1, window_bounds = array<i64: 128, 128>}, {transform_indices = @transform_2, window_bounds = array<i64: 1, 128>}, {transform_indices = @transform_3, window_bounds = array<i64: 128, 128>}, {pipeline_mode = #tpu.pipeline_mode<synchronous>, transform_indices = @transform_4, window_bounds = array<i64: 1, 128>}, {transform_indices = @transform_5, window_bounds = array<i64: 8, 128>}]} {
    %c0 = arith.constant 0 : index
    %c0_0 = arith.constant 0 : index
    %0 = vector.load %arg2[%c0, %c0_0] : memref<8x128xf32, #tpu.memory_space<vmem>>, vector<8x128xf32>
    %c0_1 = arith.constant 0 : index
    %c0_2 = arith.constant 0 : index
    %1 = vector.load %arg3[%c0_1, %c0_2] : memref<128x128xf32, #tpu.memory_space<vmem>>, vector<128x128xf32>
    %cst = arith.constant dense<0.000000e+00> : vector<8x128xf32>
    %2 = tpu.matmul %0, %1, %cst {dimension_numbers = #tpu.dot_dimension_numbers<[1], [0], [0], [1], [0, 0, 1, 1], [], []>} : vector<8x128xf32>, vector<128x128xf32>, vector<8x128xf32> -> vector<8x128xf32>
    %c0_3 = arith.constant 0 : index
    %c0_4 = arith.constant 0 : index
    %3 = vector.load %arg4[%c0_3, %c0_4] : memref<1x128xf32, #tpu.memory_space<vmem>>, vector<1x128xf32>
    %4 = vector.broadcast %3 : vector<1x128xf32> to vector<8x128xf32>
    %5 = arith.addf %2, %4 : vector<8x128xf32>
    %cst_5 = arith.constant 0.000000e+00 : f32
    %6 = vector.broadcast %cst_5 : f32 to vector<8x128xf32>
    %7 = arith.maximumf %5, %6 : vector<8x128xf32>
    %c0_6 = arith.constant 0 : index
    %c0_7 = arith.constant 0 : index
    %8 = vector.load %arg5[%c0_6, %c0_7] : memref<128x128xf32, #tpu.memory_space<vmem>>, vector<128x128xf32>
    %cst_8 = arith.constant dense<0.000000e+00> : vector<8x128xf32>
    %9 = tpu.matmul %7, %8, %cst_8 {dimension_numbers = #tpu.dot_dimension_numbers<[1], [0], [0], [1], [0, 0, 1, 1], [], []>} : vector<8x128xf32>, vector<128x128xf32>, vector<8x128xf32> -> vector<8x128xf32>
    %c0_i32 = arith.constant 0 : i32
    %10 = arith.cmpi eq, %arg1, %c0_i32 : i32
    %11 = arith.extui %10 : i1 to i32
    %c0_i32_9 = arith.constant 0 : i32
    %12 = arith.cmpi ne, %11, %c0_i32_9 : i32
    scf.if %12 {
      %c0_14 = arith.constant 0 : index
      %c0_15 = arith.constant 0 : index
      %19 = vector.load %arg6[%c0_14, %c0_15] : memref<1x128xf32, #tpu.memory_space<vmem>>, vector<1x128xf32>
      %20 = vector.broadcast %19 : vector<1x128xf32> to vector<8x128xf32>
      %21 = arith.addf %9, %20 : vector<8x128xf32>
      %c0_16 = arith.constant 0 : index
      %c0_17 = arith.constant 0 : index
      %22 = vector.load %arg8[%c0_16, %c0_17] : memref<8x128xf32, #tpu.memory_space<vmem>>, vector<8x128xf32>
      tpu.vector_store %arg8[%c0_16, %c0_17], %21 {strides = array<i32>} : memref<8x128xf32, #tpu.memory_space<vmem>>, vector<8x128xf32>,
    } else {
    }
    %c0_i32_10 = arith.constant 0 : i32
    %13 = arith.cmpi sgt, %arg1, %c0_i32_10 : i32
    %14 = arith.extui %13 : i1 to i32
    %c0_i32_11 = arith.constant 0 : i32
    %15 = arith.cmpi ne, %14, %c0_i32_11 : i32
    scf.if %15 {
      %c0_14 = arith.constant 0 : index
      %c0_15 = arith.constant 0 : index
      %19 = vector.load %arg8[%c0_14, %c0_15] : memref<8x128xf32, #tpu.memory_space<vmem>>, vector<8x128xf32>
      %20 = arith.addf %19, %9 : vector<8x128xf32>
      %c0_16 = arith.constant 0 : index
      %c0_17 = arith.constant 0 : index
      %21 = vector.load %arg8[%c0_16, %c0_17] : memref<8x128xf32, #tpu.memory_space<vmem>>, vector<8x128xf32>
      tpu.vector_store %arg8[%c0_16, %c0_17], %20 {strides = array<i32>} : memref<8x128xf32, #tpu.memory_space<vmem>>, vector<8x128xf32>,
    } else {
    }
    %c0_i32_12 = arith.constant 0 : i32
    %16 = arith.cmpi eq, %arg1, %c0_i32_12 : i32
    %17 = arith.extui %16 : i1 to i32
    %c0_i32_13 = arith.constant 0 : i32
    %18 = arith.cmpi ne, %17, %c0_i32_13 : i32
    scf.if %18 {
      %c0_14 = arith.constant 0 : index
      %c0_15 = arith.constant 0 : index
      %19 = vector.load %arg8[%c0_14, %c0_15] : memref<8x128xf32, #tpu.memory_space<vmem>>, vector<8x128xf32>
      %c0_16 = arith.constant 0 : index
      %c0_17 = arith.constant 0 : index
      %20 = vector.load %arg7[%c0_16, %c0_17] : memref<8x128xf32, #tpu.memory_space<vmem>>, vector<8x128xf32>
      tpu.vector_store %arg7[%c0_16, %c0_17], %19 {strides = array<i32>} : memref<8x128xf32, #tpu.memory_space<vmem>>, vector<8x128xf32>,
    } else {
    }
    return
  }
  func.func @transform_0(%arg0: i32, %arg1: i32) -> (i32, i32) {
    %c0_i32 = arith.constant 0 : i32
    %c0_i32_0 = arith.constant 0 : i32
    return %arg0, %c0_i32 : i32, i32
  }
  func.func @transform_1(%arg0: i32, %arg1: i32) -> (i32, i32) {
    %c0_i32 = arith.constant 0 : i32
    %c0_i32_0 = arith.constant 0 : i32
    return %c0_i32, %arg1 : i32, i32
  }
  func.func @transform_2(%arg0: i32, %arg1: i32) -> (i32, i32) {
    %c0_i32 = arith.constant 0 : i32
    %c0_i32_0 = arith.constant 0 : i32
    return %c0_i32, %arg1 : i32, i32
  }
  func.func @transform_3(%arg0: i32, %arg1: i32) -> (i32, i32) {
    %c0_i32 = arith.constant 0 : i32
    %c0_i32_0 = arith.constant 0 : i32
    return %arg1, %c0_i32 : i32, i32
  }
  func.func @transform_4(%arg0: i32, %arg1: i32) -> (i32, i32) {
    %c0_i32 = arith.constant 0 : i32
    %c0_i32_0 = arith.constant 0 : i32
    %c0_i32_1 = arith.constant 0 : i32
    return %c0_i32, %c0_i32_0 : i32, i32
  }
  func.func @transform_5(%arg0: i32, %arg1: i32) -> (i32, i32) {
    %c0_i32 = arith.constant 0 : i32
    %c0_i32_0 = arith.constant 0 : i32
    return %arg0, %c0_i32 : i32, i32
  }
}

</mosaic_0001>

<bundles_post_ra>
// kernel: tpu_custom_call.1
= control target key start
LH: loop header
LB: loop body
LE: loop exit
PB: predicated region body
PF: predicated region fallthrough
CT: control target
= control target key end

     0   :  { %10 = vsyncpa [#allocation4], 0  ;;  %s1020_s0 = inlined_call_operand.hbm [shape: f32[16,128], index: 0, kind: input, shape index: {}]   ;;  %s1021_s1 = inlined_call_operand.hbm [shape: f32[128,128], index: 1, kind: input, shape index: {}]   ;;  %s1022_s2 = inlined_call_operand.vmem [shape: f32[1,128], index: 2, kind: input, shape index: {}]   ;;  %s1023_s3 = inlined_call_operand.hbm [shape: f32[128,128], index: 3, kind: input, shape index: {}]   ;;  %s1024_s4 = inlined_call_operand.vmem [shape: f32[1,128], index: 4, kind: input, shape index: {}]   ;;  %s1025_s5 = inlined_call_operand.hbm [shape: f32[16,128], index: 5, kind: output, shape index: {}]  }
   0x1   :  { %12 = vsyncpa [#allocation4 + $0x1], 0 }
   0x2   :  { %13 = vsyncpa [#allocation7], 0 }
   0x3   :  { %14 = vsyncpa [#allocation5], 0 }
   0x4   :  { %16 = vsyncpa [#allocation5 + $0x1], 0  ;;  %s863_s18 = smov 0   ;;  %s865_s19 = smov 0  }
   0x5   :  { %s867_s20 = smov 0   ;;  %s869_s21 = smov 0  }
   0x6   :  { %s871_s22 = smov 0   ;;  %s873_s23 = smov 0  }
   0x7 LB: > { %s546_s24 = sadd.s32 4294967295, %s827_s23   ;;  %p548_p0 = scmp.ge.s32.totalorder %s827_s23, 1  ;;  %s827_s23 = sphi %s873_s23, %s22_s23   ;;  %s823_s22 = sphi %s871_s22, %s1035_s22   ;;  %s819_s21 = sphi %s869_s21, %s1034_s21   ;;  %s815_s20 = sphi %s867_s20, %s1033_s20   ;;  %s811_s19 = sphi %s865_s19, %s1032_s19   ;;  %s807_s18 = sphi %s863_s18, %s1031_s18  }
   0x8   : > { %p897_p1 = scmp.eq.s32.totalorder %s546_s24, 0  ;;  %p190_p2 = scmp.lt.s32.totalorder %s827_s23, 3 }
   0x9   : > { %s203_s28 = sshll.u32 %s1021_s1, 4  ;;  %s829_s30 = smov [#allocation6]   ;;  %s204_s28 = int_to_ptr.hbm [resolvable:$true] %s203_s28 }
   0xa   : > { %p905_p3 = pnand %p548_p0, %p190_p2  ;;  %s205_s6 = sshll.u32 %s829_s30, 4  ;;  %s206_s6 = int_to_ptr.vmem [resolvable:$true] %s205_s6 }
   0xb   : > { %p552_p6 = scmp.ge.s32.totalorder %s827_s23, 2  ;;  %s226_s9 = sshll.u32 %s1023_s3, 4  ;;  %s227_s9 = int_to_ptr.hbm [resolvable:$true] %s226_s9 }
   0xc   : > { %p576_p4 = pneg %p905_p3  ;;  %s830_s10 = smov 128  }
   0xd   : > { %s831_s11 = smov 8   ;;  %s832_s12 = smov [#allocation8]  }
   0xe   : > { %p577_p5 = pnand %p576_p4, %p897_p1  ;;  %s228_s13 = sshll.u32 %s832_s12, 4  ;;  %s229_s13 = int_to_ptr.vmem [resolvable:$true] %s228_s13 }
   0xf   : > { %s34_s14 = sadd.s32 1, %s823_s22  ;;  %s547_s15 = sadd.s32 4294967294, %s827_s23  }
  0x10   : > { %579 = dma.hbm_to_vmem [thread:$0]  (!%p577_p5), %s204_s28, 2048, %s206_s6, [#allocation7], %s830_s10, %s830_s10, %s831_s11  }
  0x11   : > { %582 = dma.hbm_to_vmem [thread:$0]  (!%p577_p5), %s227_s9, 2048, %s229_s13, [#allocation7], %s830_s10, %s830_s10, %s831_s11  }
  0x12   : > { %p36_p7 = scmp.ge.s32.totalorder %s34_s14, 2  ;;  %s41_s16 = sadd.s32 1, %s815_s20 }
  0x13   : > { %p48_p8 = scmp.ne.s32.totalorder %s815_s20, %s811_s19  ;;  %p49_p9 = scmp.eq.s32.totalorder %s827_s23, 0 }
  0x14   : > { %s1037_s14 = smov (%p36_p7, %s34_s14), 0  ;;  %p54_p10 = scmp.ne.s32.totalorder %s811_s19, %s807_s18 }
  0x15   : > { %s38_s17 = ssub.s32 %s823_s22, %s1037_s14  ;;  %p177_p11 = scmp.eq.s32.totalorder %s546_s24, 1 }
  0x16   : > { %p39_p12 = scmp.eq.s32.totalorder %s38_s17, 0  ;;  %p933_p13 = por %p897_p1, %p54_p10 }
  0x17   : > { %p937_p0 = por %p177_p11, %p48_p8  ;;  %p183_p2 = scmp.eq.s32.totalorder %s547_s15, 1 }
  0x18   : > { %s942_s28 = scalar_select %p39_p12, %s815_s20, %s41_s16  }
  0x19   : > { %p50_p4 = por %p49_p9, %p48_p8  ;;  %p944_p5 = por %p183_p2, %p54_p10 }
  0x1a   : > { %s245_s6 = sand.u32 1, %s815_s20   ;;  %s554_s24 = sshll.u32 %s823_s22, 3 }
  0x1b   : > { %p593_p7 = scmp.lt.s32.totalorder %s827_s23, 2  ;;  %s553_s7 = sshll.u32 %s245_s6, 3 }
  0x1c   : > { %s253_s10 = scalar_lea.hbm %s1020_s0, %s554_s24  ;;  %s249_s12 = scalar_lea.vmem [#allocation3], %s553_s7 }
  0x1d   : > { %s255_s11 = sshll.u32 %s253_s10, 4  ;;  %s257_s13 = sshll.u32 %s249_s12, 4  ;;  %s256_s11 = int_to_ptr.hbm [resolvable:$true] %s255_s11  ;;  %s258_s13 = int_to_ptr.vmem [resolvable:$true] %s257_s13 }
  0x1e   : > { %p584_p11 = pnand %p593_p7, %p50_p4  ;;  %s246_s15 = scalar_lea.sflag [#allocation4], %s245_s6 }
  0x1f   : > { %266 = sbr.rel (%p905_p3) target bundleno = 332 (0x14c), region = 40  ;;  %s957_s16 = sand.u32 (!%p905_p3), 1, %s811_s19  }
  0x20   : > { %586 = dma.hbm_to_vmem [thread:$0]  (!%p584_p11), %s256_s11, 128, %s258_s13, %s246_s15  }
  0x21   : > { %s556_s17 = sshll.u32 (!%p905_p3), %s957_s16, 3  ;;  %s269_s24 = scalar_lea.sflag (!%p905_p3), [#allocation4], %s957_s16 }
  0x22   : > { %s963_s7 = scalar_lea.vmem (!%p905_p3), [#allocation3], %s556_s17 }
  0x24   : > { %794 = dma.done.wait (%p933_p13), %s269_s24, 128  }
  0x25   : > { %796 = vsyncadd (%p933_p13), %s269_s24, 4294967168 }
  0x26   : > { %798 = dma.done.wait (%p897_p1), [#allocation7], 4096  }
  0x27   : > { %800 = vsyncadd (%p897_p1), [#allocation7], 4294963200  ;;  %v333_v0 = vld [vmem:[#allocation6 + $0x78] sm:$0xff]  ;;  %v332_v1 = vld [vmem:[#allocation6 + $0x70] sm:$0xff]  ;;  %s561_s26 = sshll.u32 %s819_s21, 3  ;;  %s312_s12 = scalar_lea.vmem [#allocation9], %s556_s17 }
  0x28   : > { %338 = vmatpush.msra.mxu0 %v333_v0  ;;  %v331_v2 = vld [vmem:[#allocation6 + $0x68] sm:$0xff]  ;;  %v330_v3 = vld [vmem:[#allocation6 + $0x60] sm:$0xff]  ;;  %v374_v4 = vld [vmem:[#allocation8 + $0x78] sm:$0xff]  ;;  %s428_s9 = scalar_lea.hbm %s1025_s5, %s561_s26  ;;  %s430_s13 = sshll.u32 %s312_s12, 4  ;;  %s431_s13 = int_to_ptr.vmem [resolvable:$true] %s430_s13 }
  0x29   : > { %v329_v5 = vld [vmem:[#allocation6 + $0x58] sm:$0xff]  ;;  %375 = vmatpush.msra.mxu1 %v374_v4  ;;  %v373_v6 = vld [vmem:[#allocation8 + $0x70] sm:$0xff]  ;;  %v372_v7 = vld [vmem:[#allocation8 + $0x68] sm:$0xff]  ;;  %s432_s15 = sshll.u32 %s428_s9, 4  ;;  %s418_s24 = scalar_lea.sflag [#allocation5], %s957_s16  ;;  %s433_s15 = int_to_ptr.hbm [resolvable:$true] %s432_s15 }
  0x2a   : > { %339 = vmatpush.msra.mxu0 %v332_v1  ;;  %v328_v8 = vld [vmem:[#allocation6 + $0x50] sm:$0xff]  ;;  %v371_v9 = vld [vmem:[#allocation8 + $0x60] sm:$0xff]  ;;  %v327_v10 = vld [vmem:[#allocation6 + $0x48] sm:$0xff]  ;;  %s755_s21 = sshra.s32 %s433_s15, 4  ;;  %s761_s26 = scalar_lea.hbm %s1025_s5, 16  ;;  %s756_s21 = int_to_ptr.hbm [resolvable:$true] %s755_s21 }
  0x2b   : > { %376 = vmatpush.msra.mxu1 %v373_v6  ;;  %v370_v11 = vld [vmem:[#allocation8 + $0x58] sm:$0xff]  ;;  %v326_v12 = vld [vmem:[#allocation6 + $0x40] sm:$0xff]  ;;  %v369_v13 = vld [vmem:[#allocation8 + $0x50] sm:$0xff]  ;;  %p762_p9 = scmp.lt.s32.totalorder %s756_s21, %s1025_s5 }
  0x2c   : > { %340 = vmatpush.msra.mxu0 %v331_v2  ;;  %v325_v14 = vld [vmem:[#allocation6 + $0x38] sm:$0xff]  ;;  %v368_v15 = vld [vmem:[#allocation8 + $0x48] sm:$0xff]  ;;  %v324_v16 = vld [vmem:[#allocation6 + $0x30] sm:$0xff] }
  0x2d   : > { %377 = vmatpush.msra.mxu1 %v372_v7  ;;  %v367_v17 = vld [vmem:[#allocation8 + $0x40] sm:$0xff]  ;;  %v323_v18 = vld [vmem:[#allocation6 + $0x28] sm:$0xff]  ;;  %v366_v19 = vld [vmem:[#allocation8 + $0x38] sm:$0xff] }
  0x2e   : > { %341 = vmatpush.msra.mxu0 %v330_v3  ;;  %v322_v20 = vld [vmem:[#allocation6 + $0x20] sm:$0xff]  ;;  %v365_v21 = vld [vmem:[#allocation8 + $0x30] sm:$0xff]  ;;  %v321_v22 = vld [vmem:[#allocation6 + $0x18] sm:$0xff] }
  0x2f   : > { %378 = vmatpush.msra.mxu1 %v371_v9  ;;  %v364_v23 = vld [vmem:[#allocation8 + $0x28] sm:$0xff]  ;;  %v320_v24 = vld [vmem:[#allocation6 + $0x10] sm:$0xff]  ;;  %v363_v25 = vld [vmem:[#allocation8 + $0x20] sm:$0xff] }
  0x30   : > { %342 = vmatpush.msra.mxu0 %v329_v5  ;;  %v319_v26 = vld [vmem:[#allocation6 + $0x8] sm:$0xff]  ;;  %v362_v27 = vld [vmem:[#allocation8 + $0x18] sm:$0xff]  ;;  %v318_v28 = vld [vmem:[#allocation6] sm:$0xff] }
  0x31   : > { %379 = vmatpush.msra.mxu1 %v370_v11  ;;  %v317_v29 = vld [vmem:[%s963_s7] sm:$0xff]  ;;  %v360_v31 = vld [vmem:[#allocation8 + $0x8] sm:$0xff]  ;;  %v359_v32 = vld [vmem:[#allocation8] sm:$0xff]  ;;  %s757_s7 = scalar_lea.hbm %s756_s21, 8 }
  0x32   : > { %343 = vmatpush.msra.mxu0 %v328_v8  ;;  %v361_v30 = vld [vmem:[#allocation8 + $0x10] sm:$0xff]  ;;  %p758_p1 = scmp.ne.s32.totalorder %s756_s21, %s757_s7  ;;  %p763_p10 = scmp.lt.s32.totalorder %s761_s26, %s757_s7 }
  0x33   : > { %380 = vmatpush.msra.mxu1 %v369_v13  ;;  %v649_v33 = vld [vmem:[%s1022_s2] ss:$0 sm:$0xff] }
  0x34   : > { %344 = vmatpush.msra.mxu0 %v327_v10  ;;  %v650_v37 = vld [vmem:[%s1024_s4] ss:$0 sm:$0xff]  ;;  %p759_p3 = pnand %p758_p1, %p937_p0  ;;  %p764_p12 = por %p763_p10, %p762_p9 }
  0x35   : > { %381 = vmatpush.msra.mxu1 %v368_v15 }
  0x36   : > { %345 = vmatpush.msra.mxu0 %v326_v12  ;;  %p760_p8 = pneg %p759_p3 }
  0x37   : > { %382 = vmatpush.msra.mxu1 %v367_v17 }
  0x38   : > { %346 = vmatpush.msra.mxu0 %v325_v14  ;;  %p765_p13 = pnand %p764_p12, %p760_p8 }
  0x39   : > { %383 = vmatpush.msra.mxu1 %v366_v19 }
  0x3a   : > { %347 = vmatpush.msra.mxu0 %v324_v16 }
  0x3b   : > { %384 = vmatpush.msra.mxu1 %v365_v21 }
  0x3c   : > { %348 = vmatpush.msra.mxu0 %v323_v18 }
  0x3d   : > { %385 = vmatpush.msra.mxu1 %v364_v23 }
  0x3e   : > { %349 = vmatpush.msra.mxu0 %v322_v20 }
  0x3f   : > { %386 = vmatpush.msra.mxu1 %v363_v25 }
  0x40   : > { %350 = vmatpush.msra.mxu0 %v321_v22 }
  0x41   : > { %387 = vmatpush.msra.mxu1 %v362_v27 }
  0x42   : > { %351 = vmatpush.msra.mxu0 %v320_v24 }
  0x43   : > { %388 = vmatpush.msra.mxu1 %v361_v30 }
  0x44   : > { %352 = vmatpush.msra.mxu0 %v319_v26 }
  0x45   : > { %389 = vmatpush.msra.mxu1 %v360_v31 }
  0x46   : > { %353 = vmatpush.msra.mxu0 %v318_v28 }
  0x47   : > { %354 = vmatmul.f32.vlgmr.msra.gmra.mxu0 %v317_v29  ;;  %390 = vmatpush.msra.mxu1 %v359_v32 }
  0xc4   : > { %v355_v34 = vpop.f32.mrf.mxu0 }
  0xc5   : > { %v356_v35 = vadd.f32 %v649_v33, %v355_v34 }
  0xc7   : > { %v358_v36 = vmax.f32 %v356_v35, 0.0 }
  0xc9   : > { %391 = vmatmul.f32.vlgmr.msra.gmra.mxu1 %v358_v36 }
 0x146   : > { %v392_v38 = vpop.f32.mrf.mxu1 }
 0x147   : > { %v403_v39 = vadd.f32 %v650_v37, %v392_v38 }
 0x149   : > { %416 = vst [vmem:[%s312_s12] sm:$0xff] %v403_v39 }
 0x14a   : > { %768 = shalt.err (!%p765_p13)
}
 0x14b   : > { %574 = dma.vmem_to_hbm [thread:$0]  (%p937_p0), %s431_s13, 128, %s433_s15, %s418_s24  }
 0x14c PF: > { %s444_s16 = sand.u32 1, %s807_s18   ;;  %p588_p2 = pnand %p552_p6, %p944_p5 }
 0x14d   : > { %s445_s8 = scalar_lea.sflag [#allocation5], %s444_s16 }
 0x14e   : > { %p589_p4 = pneg %p588_p2 }
 0x150   : > { %802 = dma.done.wait (%p589_p4), %s445_s8, 128  }
 0x151   : > { %804 = vsyncadd (%p589_p4), %s445_s8, 4294967168  ;;  %s22_s23 = sadd.s32 1, %s827_s23   ;;  %s1031_s18 = smov %s811_s19 }
 0x152   : > { %p19_p7 = scmp.ge.s32.totalorder %s22_s23, 4   ;;  %s1032_s19 = smov %s815_s20 }
 0x153   : > { %s1033_s20 = smov %s942_s28  ;;  %s1034_s21 = smov %s823_s22 }
 0x154   : > { %s1035_s22 = smov %s1037_s14  ;;  %21 = sbr.rel (!%p19_p7) target bundleno = 7 (0x7), region = 110 }
 0x159   :  { %451 = vsyncpa [#allocation4], 1 }
 0x15a   :  { %453 = vsyncpa [#allocation4 + $0x1], 1 }
 0x15b   :  { %454 = vsyncpa [#allocation7], 1 }
 0x15c   :  { %455 = vsyncpa [#allocation5], 1 }
 0x15d   :  { %457 = vsyncpa [#allocation5 + $0x1], 1 }

</bundles_post_ra>
